<compile_context>
chip_gen: v6e
topology: v6e:2x2x1
jax: 0.10.0
libtpu: 0.0.40
codegen_flags: <defaults>
</compile_context>

<pallas_src>
import math
import numpy as np
import jax
import jax.numpy as jnp
from jax.experimental import pallas as pl
from jax.experimental.pallas import tpu as pltpu

# ---------------- Config (a small but faithful RenderingNetwork) -------------
D_FEATURE = 8
MODE = "idr"            # rendering_input = cat([points, view_dirs, normals])
D_IN = 9                # 3 (points) + 3 (view_dirs) + 3 (normals)
D_OUT = 3
D_HIDDEN = 32
N_LAYERS = 4
SKIP_IN = (2,)
WEIGHT_NORM = True
MULTIRES_VIEW = 0
SQUEEZE_OUT = True


def _round_up(v, m):
    return ((v + m - 1) // m) * m


def network_dims():
    """Replicates the dims / per-layer (in, out) logic of __init__."""
    dims = [D_IN] + [D_HIDDEN + D_FEATURE for _ in range(N_LAYERS)] + [D_OUT]
    num_layers = len(dims)
    layer_io = []
    for l in range(num_layers - 1):
        if l + 1 in SKIP_IN:
            out_dim = dims[l + 1] - dims[0]
        else:
            out_dim = dims[l + 1]
        if l < num_layers - 2:
            out_dim = out_dim - D_FEATURE
        layer_io.append((dims[l], out_dim))
    return dims, num_layers, layer_io


DIMS, NUM_LAYERS, LAYER_IO = network_dims()   # [(9,32),(40,23),(40,32),(40,3)]

# ---------------- Slab / packed-weight layout (aligned row bands) ------------
ROW_ALIGN = 16                                   # tile-aligned for bf16 & f32
X_ROWS = _round_up(max(o for (_i, o) in LAYER_IO[:-1]), ROW_ALIGN)   # 32
SLAB_X = 0
SLAB_RIN = X_ROWS                                # rows 32:41  (9 used)
SLAB_FEAT = _round_up(SLAB_RIN + D_IN, 8)        # rows 48:56
SLAB_ONES = SLAB_FEAT + D_FEATURE                # row  56  (constant 1 -> bias)
SLAB_ROWS = _round_up(SLAB_ONES + 1, 8)          # 64
IN_ROWS = SLAB_ROWS - X_ROWS                     # 32 per-point packed channels

OUT_PAD = [_round_up(o, ROW_ALIGN) for (_i, o) in LAYER_IO]    # 32,32,32,16
ROW_OFFS = [int(v) for v in np.cumsum([0] + OUT_PAD[:-1])]     # 0,32,64,96
PACK_ROWS = int(sum(OUT_PAD))                                  # 112
PACK_COLS = SLAB_ROWS                                          # 64
BIAS_COL = SLAB_ONES


# ------------------------------ Parameters ------------------------------------
def init_params(key):
    """PyTorch-Linear-style init + weight_norm reparam; torch [out, in] layout."""
    params = []
    for (fan_in, fan_out) in LAYER_IO:
        key, k_w, k_b = jax.random.split(key, 3)
        bound = 1.0 / math.sqrt(fan_in)
        v = jax.random.uniform(k_w, (fan_out, fan_in), jnp.float32, -bound, bound)
        b = jax.random.uniform(k_b, (fan_out,), jnp.float32, -bound, bound)
        if WEIGHT_NORM:
            # weight_norm: W = g * v / ||v||, g initialized to ||v||.
            norm = jnp.linalg.norm(v, axis=1, keepdims=True)
            w_eff = norm * v / norm
        else:
            w_eff = v
        params.append((w_eff, b))
    return params


def pack_params(params, dtype=jnp.bfloat16):
    """Pack all W/b into one (PACK_ROWS, PACK_COLS) buffer.

    Weight columns are placed at the slab-row offsets they multiply, so every
    layer is a single dot against the whole slab.  The 1/sqrt(2) skip scaling
    (applied in the reference to cat([x, rin]) but NOT to the appended feature
    vector) is folded into the corresponding weight columns; the bias is placed
    in the column that multiplies the constant-ones slab row.
    """
    inv_sqrt2 = 1.0 / math.sqrt(2.0)
    wb = np.zeros((PACK_ROWS, PACK_COLS), np.float32)
    dst = {"x": SLAB_X, "rin": SLAB_RIN, "feat": SLAB_FEAT}
    for l, (w, b) in enumerate(params):
        w = np.asarray(w, np.float32)
        b = np.asarray(b, np.float32).reshape(-1)
        out_dim, fan_in = w.shape
        # Column order of the torch Linear's input, per forward():
        segs = []                                  # (band, width, scale)
        if l == 0:
            segs.append(("rin", D_IN, 1.0))
        else:
            sc = inv_sqrt2 if l in SKIP_IN else 1.0
            segs.append(("x", LAYER_IO[l - 1][1], sc))
            if l in SKIP_IN:
                segs.append(("rin", D_IN, sc))
            if l < NUM_LAYERS - 1:                 # 0 < l < num_layers - 1
                segs.append(("feat", D_FEATURE, 1.0))
        assert sum(wd for (_n, wd, _s) in segs) == fan_in
        r0 = ROW_OFFS[l]
        col = 0
        for name, wd, sc in segs:
            wb[r0:r0 + out_dim, dst[name]:dst[name] + wd] = w[:, col:col + wd] * sc
            col += wd
        wb[r0:r0 + out_dim, BIAS_COL] = b          # picked up by the ones row
    return jnp.asarray(wb, dtype=dtype)


# ------------------------------ Pallas kernel ---------------------------------
def rendering_kernel(xin_ref, wb_ref, out_ref, slab_ref):
    # xin_ref : (IN_ROWS, tile_n)   channel-major [rin | 0 | feat | 1 | 0]
    # wb_ref  : (PACK_ROWS, PACK_COLS) packed weights (+ bias via ones column)
    # out_ref : (D_OUT, tile_n)
    # slab_ref: (SLAB_ROWS, tile_n) VMEM activation slab
    tile = slab_ref.shape[1]
    # rows [0:32)  : current activation x (overwritten layer by layer)
    # rows [32:64) : per-point packed inputs (copied once per tile)
    slab_ref[0:X_ROWS, :] = jnp.zeros((X_ROWS, tile), slab_ref.dtype)
    slab_ref[X_ROWS:SLAB_ROWS, :] = xin_ref[...]

    for l in range(NUM_LAYERS - 1):
        r0 = ROW_OFFS[l]
        op = OUT_PAD[l]
        w = wb_ref[r0:r0 + op, :]                   # (op, 64), tile-aligned band
        acc = jnp.dot(w, slab_ref[...], preferred_element_type=jnp.float32)
        if l < NUM_LAYERS - 2:
            slab_ref[0:op, :] = jnp.maximum(acc, 0.0).astype(slab_ref.dtype)
        else:
            y = acc[0:D_OUT, :]
            if SQUEEZE_OUT:
                y = jax.nn.sigmoid(y)
            out_ref[...] = y.astype(out_ref.dtype)


# ------------------------------ Wrapper ----------------------------------------
def rendering_network_forward(points, normals, view_dirs, feature_vectors,
                              packed_wb, tile_n=8192):
    if MODE == "idr":
        parts = [points, view_dirs, normals]
    elif MODE == "no_view_dir":
        parts = [points, normals]
    elif MODE == "no_normal":
        parts = [points, view_dirs]
    else:
        raise ValueError(MODE)
    assert sum(int(p.shape[-1]) for p in parts) == D_IN

    N = points.shape[0]
    cdtype = packed_wb.dtype

    # Single fused XLA op builds the channel-major, lane-dense packed input:
    #   rows 0:9 rin, 9:16 zeros, 16:24 feat, 24 ones, 25:32 zeros.
    rows = [p.T for p in parts]
    rows.append(jnp.zeros((SLAB_FEAT - SLAB_RIN - D_IN, N), jnp.float32))
    rows.append(feature_vectors.T)
    rows.append(jnp.ones((1, N), jnp.float32))
    rows.append(jnp.zeros((SLAB_ROWS - SLAB_ONES - 1, N), jnp.float32))
    xin = jnp.concatenate(rows, axis=0).astype(cdtype)
    assert xin.shape[0] == IN_ROWS

    assert tile_n % 128 == 0
    tile_n = min(tile_n, _round_up(max(N, 1), 128))
    # Multi-TensorCore parts (v7x) shard the "parallel" grid axis across cores:
    # prefer a grid of length >= 2 whenever N is large enough for decent tiles.
    if N > 1024 and _round_up(N, tile_n) // tile_n < 2:
        tile_n = max(128, _round_up((N + 1) // 2, 128))
    n_pad = _round_up(N, tile_n)
    if n_pad != N:
        xin = jnp.pad(xin, ((0, 0), (0, n_pad - N)))

    grid = (n_pad // tile_n,)

    out_cm = pl.pallas_call(
        rendering_kernel,
        out_shape=jax.ShapeDtypeStruct((D_OUT, n_pad), jnp.float32),
        grid_spec=pltpu.PrefetchScalarGridSpec(
            num_scalar_prefetch=0,
            grid=grid,
            in_specs=[
                pl.BlockSpec((IN_ROWS, tile_n), lambda i: (0, i)),
                pl.BlockSpec((PACK_ROWS, PACK_COLS), lambda i: (0, 0)),
            ],
            out_specs=pl.BlockSpec((D_OUT, tile_n), lambda i: (0, i)),
            scratch_shapes=[pltpu.VMEM((SLAB_ROWS, tile_n), cdtype)],
        ),
        compiler_params=pltpu.CompilerParams(
            dimension_semantics=("parallel",)),
    )(xin, packed_wb)

    return out_cm[:, :N].T


# --------------------------- Pure-JAX reference --------------------------------
def reference_forward(points, normals, view_dirs, feature_vectors, params):
    if MODE == "idr":
        rin = jnp.concatenate([points, view_dirs, normals], axis=-1)
    elif MODE == "no_view_dir":
        rin = jnp.concatenate([points, normals], axis=-1)
    else:
        rin = jnp.concatenate([points, view_dirs], axis=-1)
    x = rin
    for l in range(NUM_LAYERS - 1):
        w, b = params[l]                       # w: (out, in) torch layout
        if l in SKIP_IN:
            x = jnp.concatenate([x, rin], axis=-1) / np.sqrt(2)
        if 0 < l < NUM_LAYERS - 1:
            x = jnp.concatenate([x, feature_vectors], axis=-1)
        x = x @ w.T + b
        if l < NUM_LAYERS - 2:
            x = jnp.maximum(x, 0.0)
    if SQUEEZE_OUT:
        x = jax.nn.sigmoid(x)
    return x


# ------------------------------ Main -------------------------------------------
if __name__ == "__main__":
    key = jax.random.PRNGKey(0)
    k_par, k_p, k_n, k_v, k_f = jax.random.split(key, 5)

    params = init_params(k_par)

    N = 2500  # deliberately not a multiple of the tile to exercise padding
    points = jax.random.normal(k_p, (N, 3), jnp.float32)
    normals = jax.random.normal(k_n, (N, 3), jnp.float32)
    view_dirs = jax.random.normal(k_v, (N, 3), jnp.float32)
    view_dirs = view_dirs / jnp.linalg.norm(view_dirs, axis=-1, keepdims=True)
    feature_vectors = jax.random.normal(k_f, (N, D_FEATURE), jnp.float32)

    ref = reference_forward(points, normals, view_dirs, feature_vectors, params)

    # (1) f32 validation path, small tile -> multi-step grid + tail padding.
    wb_f32 = pack_params(params, dtype=jnp.float32)
    out32 = rendering_network_forward(points, normals, view_dirs,
                                      feature_vectors, wb_f32, tile_n=256)
    out32 = jax.block_until_ready(out32)
    assert out32.shape == (N, D_OUT)
    assert jnp.allclose(out32, ref, rtol=1e-4, atol=1e-5), \
        f"f32 max abs err {float(jnp.max(jnp.abs(out32 - ref)))}"

    # (2) default bf16 fast path (MXU-native operands, f32 accumulation);
    #     exercises the grid>=2 split heuristic.  Relaxed tolerance by design.
    wb_bf16 = pack_params(params, dtype=jnp.bfloat16)
    out16 = rendering_network_forward(points, normals, view_dirs,
                                      feature_vectors, wb_bf16)
    out16 = jax.block_until_ready(out16)
    assert out16.shape == (N, D_OUT)
    assert jnp.allclose(out16, ref, rtol=0.0, atol=3e-2), \
        f"bf16 max abs err {float(jnp.max(jnp.abs(out16 - ref)))}"

    print("KERNEL_OK")
</pallas_src>

<mosaic_0001>
module attributes {stable_mosaic.version = 11 : i64} {
  func.func @rendering_kernel(%arg0: i32, %arg1: memref<32x256xf32, #tpu.memory_space<vmem>>, %arg2: memref<144x64xf32, #tpu.memory_space<vmem>>, %arg3: memref<3x256xf32, #tpu.memory_space<vmem>>, %arg4: memref<64x256xf32, #tpu.memory_space<vmem>>) attributes {dimension_semantics = [#tpu.dimension_semantics<parallel>], iteration_bounds = array<i64: 10>, scalar_prefetch = 0 : i64, scratch_operands = 1 : i64, tpu.core_type = #tpu.core_type<tc>, window_params = [{transform_indices = @transform_0, window_bounds = array<i64: 32, 256>}, {pipeline_mode = #tpu.pipeline_mode<synchronous>, transform_indices = @transform_1, window_bounds = array<i64: 144, 64>}, {transform_indices = @transform_2, window_bounds = array<i64: 3, 256>}]} {
    %cst = arith.constant 0.000000e+00 : f32
    %0 = vector.broadcast %cst : f32 to vector<32x256xf32>
    %c0 = arith.constant 0 : index
    %c0_0 = arith.constant 0 : index
    %1 = vector.load %arg4[%c0, %c0_0] : memref<64x256xf32, #tpu.memory_space<vmem>>, vector<32x256xf32>
    tpu.vector_store %arg4[%c0, %c0_0], %0 {strides = array<i32>} : memref<64x256xf32, #tpu.memory_space<vmem>>, vector<32x256xf32>,
    %c0_1 = arith.constant 0 : index
    %c0_2 = arith.constant 0 : index
    %2 = vector.load %arg1[%c0_1, %c0_2] : memref<32x256xf32, #tpu.memory_space<vmem>>, vector<32x256xf32>
    %c32 = arith.constant 32 : index
    %c0_3 = arith.constant 0 : index
    %3 = vector.load %arg4[%c32, %c0_3] : memref<64x256xf32, #tpu.memory_space<vmem>>, vector<32x256xf32>
    tpu.vector_store %arg4[%c32, %c0_3], %2 {strides = array<i32>} : memref<64x256xf32, #tpu.memory_space<vmem>>, vector<32x256xf32>,
    %c0_4 = arith.constant 0 : index
    %c0_5 = arith.constant 0 : index
    %4 = vector.load %arg2[%c0_4, %c0_5] : memref<144x64xf32, #tpu.memory_space<vmem>>, vector<32x64xf32>
    %c0_6 = arith.constant 0 : index
    %c0_7 = arith.constant 0 : index
    %5 = vector.load %arg4[%c0_6, %c0_7] : memref<64x256xf32, #tpu.memory_space<vmem>>, vector<64x256xf32>
    %cst_8 = arith.constant dense<0.000000e+00> : vector<32x256xf32>
    %6 = tpu.matmul %4, %5, %cst_8 {dimension_numbers = #tpu.dot_dimension_numbers<[1], [0], [0], [1], [0, 0, 1, 1], [], []>} : vector<32x64xf32>, vector<64x256xf32>, vector<32x256xf32> -> vector<32x256xf32>
    %cst_9 = arith.constant 0.000000e+00 : f32
    %7 = vector.broadcast %cst_9 : f32 to vector<32x256xf32>
    %8 = arith.maximumf %6, %7 : vector<32x256xf32>
    %c0_10 = arith.constant 0 : index
    %c0_11 = arith.constant 0 : index
    %9 = vector.load %arg4[%c0_10, %c0_11] : memref<64x256xf32, #tpu.memory_space<vmem>>, vector<32x256xf32>
    tpu.vector_store %arg4[%c0_10, %c0_11], %8 {strides = array<i32>} : memref<64x256xf32, #tpu.memory_space<vmem>>, vector<32x256xf32>,
    %c32_12 = arith.constant 32 : index
    %c0_13 = arith.constant 0 : index
    %10 = vector.load %arg2[%c32_12, %c0_13] : memref<144x64xf32, #tpu.memory_space<vmem>>, vector<32x64xf32>
    %c0_14 = arith.constant 0 : index
    %c0_15 = arith.constant 0 : index
    %11 = vector.load %arg4[%c0_14, %c0_15] : memref<64x256xf32, #tpu.memory_space<vmem>>, vector<64x256xf32>
    %cst_16 = arith.constant dense<0.000000e+00> : vector<32x256xf32>
    %12 = tpu.matmul %10, %11, %cst_16 {dimension_numbers = #tpu.dot_dimension_numbers<[1], [0], [0], [1], [0, 0, 1, 1], [], []>} : vector<32x64xf32>, vector<64x256xf32>, vector<32x256xf32> -> vector<32x256xf32>
    %cst_17 = arith.constant 0.000000e+00 : f32
    %13 = vector.broadcast %cst_17 : f32 to vector<32x256xf32>
    %14 = arith.maximumf %12, %13 : vector<32x256xf32>
    %c0_18 = arith.constant 0 : index
    %c0_19 = arith.constant 0 : index
    %15 = vector.load %arg4[%c0_18, %c0_19] : memref<64x256xf32, #tpu.memory_space<vmem>>, vector<32x256xf32>
    tpu.vector_store %arg4[%c0_18, %c0_19], %14 {strides = array<i32>} : memref<64x256xf32, #tpu.memory_space<vmem>>, vector<32x256xf32>,
    %c64 = arith.constant 64 : index
    %c0_20 = arith.constant 0 : index
    %16 = vector.load %arg2[%c64, %c0_20] : memref<144x64xf32, #tpu.memory_space<vmem>>, vector<32x64xf32>
    %c0_21 = arith.constant 0 : index
    %c0_22 = arith.constant 0 : index
    %17 = vector.load %arg4[%c0_21, %c0_22] : memref<64x256xf32, #tpu.memory_space<vmem>>, vector<64x256xf32>
    %cst_23 = arith.constant dense<0.000000e+00> : vector<32x256xf32>
    %18 = tpu.matmul %16, %17, %cst_23 {dimension_numbers = #tpu.dot_dimension_numbers<[1], [0], [0], [1], [0, 0, 1, 1], [], []>} : vector<32x64xf32>, vector<64x256xf32>, vector<32x256xf32> -> vector<32x256xf32>
    %cst_24 = arith.constant 0.000000e+00 : f32
    %19 = vector.broadcast %cst_24 : f32 to vector<32x256xf32>
    %20 = arith.maximumf %18, %19 : vector<32x256xf32>
    %c0_25 = arith.constant 0 : index
    %c0_26 = arith.constant 0 : index
    %21 = vector.load %arg4[%c0_25, %c0_26] : memref<64x256xf32, #tpu.memory_space<vmem>>, vector<32x256xf32>
    tpu.vector_store %arg4[%c0_25, %c0_26], %20 {strides = array<i32>} : memref<64x256xf32, #tpu.memory_space<vmem>>, vector<32x256xf32>,
    %c96 = arith.constant 96 : index
    %c0_27 = arith.constant 0 : index
    %22 = vector.load %arg2[%c96, %c0_27] : memref<144x64xf32, #tpu.memory_space<vmem>>, vector<32x64xf32>
    %c0_28 = arith.constant 0 : index
    %c0_29 = arith.constant 0 : index
    %23 = vector.load %arg4[%c0_28, %c0_29] : memref<64x256xf32, #tpu.memory_space<vmem>>, vector<64x256xf32>
    %cst_30 = arith.constant dense<0.000000e+00> : vector<32x256xf32>
    %24 = tpu.matmul %22, %23, %cst_30 {dimension_numbers = #tpu.dot_dimension_numbers<[1], [0], [0], [1], [0, 0, 1, 1], [], []>} : vector<32x64xf32>, vector<64x256xf32>, vector<32x256xf32> -> vector<32x256xf32>
    %cst_31 = arith.constant 0.000000e+00 : f32
    %25 = vector.broadcast %cst_31 : f32 to vector<32x256xf32>
    %26 = arith.maximumf %24, %25 : vector<32x256xf32>
    %c0_32 = arith.constant 0 : index
    %c0_33 = arith.constant 0 : index
    %27 = vector.load %arg4[%c0_32, %c0_33] : memref<64x256xf32, #tpu.memory_space<vmem>>, vector<32x256xf32>
    tpu.vector_store %arg4[%c0_32, %c0_33], %26 {strides = array<i32>} : memref<64x256xf32, #tpu.memory_space<vmem>>, vector<32x256xf32>,
    %c128 = arith.constant 128 : index
    %c0_34 = arith.constant 0 : index
    %28 = vector.load %arg2[%c128, %c0_34] : memref<144x64xf32, #tpu.memory_space<vmem>>, vector<16x64xf32>
    %c0_35 = arith.constant 0 : index
    %c0_36 = arith.constant 0 : index
    %29 = vector.load %arg4[%c0_35, %c0_36] : memref<64x256xf32, #tpu.memory_space<vmem>>, vector<64x256xf32>
    %cst_37 = arith.constant dense<0.000000e+00> : vector<16x256xf32>
    %30 = tpu.matmul %28, %29, %cst_37 {dimension_numbers = #tpu.dot_dimension_numbers<[1], [0], [0], [1], [0, 0, 1, 1], [], []>} : vector<16x64xf32>, vector<64x256xf32>, vector<16x256xf32> -> vector<16x256xf32>
    %31 = vector.extract_strided_slice %30 {offsets = [0, 0], sizes = [3, 256], strides = [1, 1]} : vector<16x256xf32> to vector<3x256xf32>
    %32 = arith.negf %31 : vector<3x256xf32>
    %33 = math.exp %32 : vector<3x256xf32>
    %cst_38 = arith.constant 1.000000e+00 : f32
    %34 = vector.broadcast %cst_38 : f32 to vector<3x256xf32>
    %35 = arith.addf %34, %33 : vector<3x256xf32>
    %36 = arith.divf %34, %35 : vector<3x256xf32>
    %c0_39 = arith.constant 0 : index
    %c0_40 = arith.constant 0 : index
    %37 = vector.load %arg3[%c0_39, %c0_40] : memref<3x256xf32, #tpu.memory_space<vmem>>, vector<3x256xf32>
    tpu.vector_store %arg3[%c0_39, %c0_40], %36 {strides = array<i32>} : memref<3x256xf32, #tpu.memory_space<vmem>>, vector<3x256xf32>,
    return
  }
  func.func @transform_0(%arg0: i32) -> (i32, i32) {
    %c0_i32 = arith.constant 0 : i32
    %c0_i32_0 = arith.constant 0 : i32
    return %c0_i32, %arg0 : i32, i32
  }
  func.func @transform_1(%arg0: i32) -> (i32, i32) {
    %c0_i32 = arith.constant 0 : i32
    %c0_i32_0 = arith.constant 0 : i32
    %c0_i32_1 = arith.constant 0 : i32
    return %c0_i32, %c0_i32_0 : i32, i32
  }
  func.func @transform_2(%arg0: i32) -> (i32, i32) {
    %c0_i32 = arith.constant 0 : i32
    %c0_i32_0 = arith.constant 0 : i32
    return %c0_i32, %arg0 : i32, i32
  }
}

</mosaic_0001>

<bundles_post_ra>
// kernel: tpu_custom_call.1
= control target key start
LH: loop header
LB: loop body
LE: loop exit
PB: predicated region body
PF: predicated region fallthrough
CT: control target
= control target key end

     0   :  { %7 = vsyncpa [#allocation4], 0  ;;  %s1466_s0 = inlined_call_operand.hbm [shape: f32[32,2560], index: 0, kind: input, shape index: {}]   ;;  %s1467_s1 = inlined_call_operand.vmem [shape: f32[144,64], index: 1, kind: input, shape index: {}]   ;;  %s1468_s2 = inlined_call_operand.hbm [shape: f32[3,2560], index: 2, kind: output, shape index: {}]  }
   0x1   :  { %9 = vsyncpa [#allocation4 + $0x1], 0 }
   0x2   :  { %10 = vsyncpa [#allocation5], 0 }
   0x3   :  { %12 = vsyncpa [#allocation5 + $0x1], 0  ;;  %s1163_s9 = smov 0   ;;  %s1165_s10 = smov 0  }
   0x4   :  { %s1167_s11 = smov 0   ;;  %s1169_s12 = smov 0  }
   0x5 LB: > { %s1184_s13 = sadd.s32 4294967295, %s1140_s12   ;;  %s938_s14 = sadd.s32 4294967294, %s1140_s12   ;;  %s1140_s12 = sphi %s1169_s12, %s1483_s12   ;;  %s1136_s11 = sphi %s1167_s11, %s1482_s11   ;;  %s1132_s10 = sphi %s1165_s10, %s1481_s10   ;;  %s1128_s9 = sphi %s1163_s9, %s1480_s9  }
   0x6   : > { %s1188_s15 = sadd.s32 1, %s1140_s12   ;;  %s25_s16 = sadd.s32 1, %s1136_s11 }
   0x7   : > { %s22_s17 = ssub.s32 %s1140_s12, %s1188_s15  ;;  %p32_p0 = scmp.ne.s32.totalorder %s1136_s11, %s1132_s10 }
   0x8   : > { %p23_p1 = scmp.eq.s32.totalorder %s22_s17, 0  ;;  %p33_p2 = scmp.eq.s32.totalorder %s1140_s12, 0 }
   0x9   : > { %p38_p3 = scmp.ne.s32.totalorder %s1132_s10, %s1128_s9  ;;  %p39_p4 = scmp.eq.s32.totalorder %s1184_s13, 0 }
   0xa   : > { %s1200_s18 = scalar_select %p23_p1, %s1136_s11, %s25_s16  }
   0xb   : > { %p1202_p5 = por %p33_p2, %p32_p0  ;;  %p1206_p6 = por %p39_p4, %p38_p3 }
   0xc   : > { %p83_p7 = scmp.eq.s32.totalorder %s1184_s13, 9  ;;  %p89_p8 = scmp.eq.s32.totalorder %s938_s14, 9 }
   0xd   : > { %s1472_s20 = scalar_select %p1206_p6, 1, 0 }
   0xe   : > { %p1002_p9 = scmp.lt.s32.totalorder %s1140_s12, 10  ;;  %p1212_p10 = por %p83_p7, %p32_p0 }
   0xf   : > { %p1216_p11 = por %p89_p8, %p38_p3  ;;  %s112_s23 = sand.u32 1, %s1136_s11  }
  0x10   : > { %s1473_s21 = scalar_select %p1212_p10, 1, 0 }
  0x11   : > { %s1474_s22 = scalar_select %p1216_p11, 1, 0 }
  0x12   : > { %s972_s24 = sshll.u32 %s1140_s12, 8  ;;  %s941_s25 = sshll.u32 %s112_s23, 6 }
  0x13   : > { %s1225_s28 = scalar_lea.hbm %s1466_s0, %s972_s24  ;;  %s116_s29 = scalar_lea.vmem [#allocation3], %s941_s25 }
  0x14   : > { %s123_s30 = sshll.u32 %s116_s29, 4  ;;  %p1229_p12 = pnand %p1002_p9, %p1202_p5  ;;  %s1233_s30 = int_to_ptr.vmem [resolvable:$true] %s123_s30 }
  0x15   : > { %s1236_s4 = scalar_lea.sflag [#allocation4], %s112_s23  ;;  %s1048_s5 = scalar_lea.hbm %s1225_s28, 1024 }
  0x16   : > { %p1049_p0 = scmp.ne.s32.totalorder %s1225_s28, %s1048_s5  ;;  %p1050_p1 = pneg %p1229_p12 }
  0x17   : > { %s1053_s8 = scalar_lea.hbm %s1466_s0, 10240  ;;  %p1054_p4 = scmp.lt.s32.totalorder %s1225_s28, %s1466_s0 }
  0x18   : > { %p1051_p2 = pnand %p1050_p1, %p1049_p0  ;;  %p1055_p5 = scmp.lt.s32.totalorder %s1053_s8, %s1048_s5 }
  0x1a   : > { %p1052_p3 = pneg %p1051_p2  ;;  %p1056_p7 = por %p1055_p5, %p1054_p4 }
  0x1c   : > { %p1057_p8 = pnand %p1056_p7, %p1052_p3 }
  0x1e   : > { %1060 = shalt.err (!%p1057_p8)
}
  0x1f   : > { %s1061_s17 = scalar_lea.vmem %s1233_s30, 1024  ;;  %s1142_s19 = smov [#allocation3]  }
  0x20   : > { %p1062_p9 = scmp.ne.s32.totalorder %s1233_s30, %s1061_s17  ;;  %s1066_s23 = sshll.u32 %s1142_s19, 4  ;;  %s1067_s23 = int_to_ptr.vmem [resolvable:$false] %s1066_s23 }
  0x21   : > { %s1068_s24 = scalar_lea.vmem %s1067_s23, 2048  ;;  %p1069_p2 = scmp.lt.s32.totalorder %s1233_s30, %s1067_s23 }
  0x22   : > { %p1064_p13 = pnand %p1062_p9, %p1050_p1  ;;  %p1070_p11 = scmp.lt.s32.totalorder %s1068_s24, %s1061_s17 }
  0x24   : > { %p1065_p0 = pneg %p1064_p13  ;;  %p1071_p10 = por %p1070_p11, %p1069_p2 }
  0x26   : > { %p1072_p6 = pnand %p1071_p10, %p1065_p0 }
  0x28   : > { %1075 = shalt.err (!%p1072_p6)
}
  0x29   : > { %s1143_s25 = smov 2560   ;;  %s1144_s26 = smov 256  }
  0x2a   : > { %s1145_s27 = smov 16   ;;  %p131_p13 = scmp.lt.s32.totalorder %s1140_s12, 11 }
  0x2b   : > { %997 = dma.hbm_to_vmem [thread:$0]  (!%p1229_p12), %s1225_s28, 1024, %s1233_s30, %s1236_s4, %s1143_s25, %s1144_s26, %s1145_s27  }
  0x2c   : > { %p1476_p1 = scmp.ge.s32.totalorder %s1140_s12, 1 }
  0x2e   : > { %p132_p3 = pnand %p1476_p1, %p131_p13 }
  0x2f   : > { %s1261_s29 = sand.u32 (!%p132_p3), 1, %s1132_s10   ;;  %p1477_p6 = scmp.ne.s32.totalorder (!%p132_p3), %s1472_s20, 0 }
  0x30   : > { %135 = sbr.rel (%p132_p3) target bundleno = 1182 (0x49e), region = 28  ;;  %s945_s5 = sshll.u32 (!%p132_p3), %s1261_s29, 6 }
  0x31   : > { %s138_s6 = scalar_lea.sflag (!%p132_p3), [#allocation4], %s1261_s29  ;;  %s141_s7 = scalar_lea.vmem (!%p132_p3), [#allocation3], %s945_s5 }
  0x35   : > { %1119 = dma.done.wait (%p1477_p6), %s138_s6, 1024  }
  0x36   : > { %1121 = vsyncadd (%p1477_p6), %s138_s6, 4294966272  ;;  %v1146_v0 = vmov 0.0   ;;  %v1271_v1 = vld [vmem:[%s141_s7 + $0x38] sm:$0xff]  ;;  %v1273_v2 = vld [vmem:[%s141_s7 + $0x30] sm:$0xff]  ;;  %vm208_vm0 = vcmask 523264   ;;  %s946_s20 = sshll.u32 %s1261_s29, 3 }
  0x37   : > { %285 = vmatprep.mubr.f32.mxu0 %v1146_v0  ;;  %422 = vmatprep.mubr.f32.mxu1 %v1146_v0  ;;  %v1275_v3 = vld [vmem:[%s141_s7 + $0x28] sm:$0xff]  ;;  %v1278_v4 = vld [vmem:[%s141_s7 + $0x20] sm:$0xff]  ;;  %v1282_v5 = vld [vmem:[%s141_s7 + $0x18] sm:$0xff]  ;;  %s973_s28 = sshll.u32 %s1184_s13, 7  ;;  %s161_s30 = scalar_lea.vmem [#allocation6], %s946_s20 }
  0x38   : > { %237 = vmatprep.subr.mxu0 %v1271_v1  ;;  %374 = vmatprep.subr.mxu1 %v1271_v1  ;;  %v1286_v6 = vld [vmem:[%s141_s7 + $0x10] sm:$0xff]  ;;  %v1290_v7 = vld [vmem:[%s141_s7 + $0x8] sm:$0xff]  ;;  %v1294_v8 = vld [vmem:[%s141_s7] sm:$0xff]  ;;  %s868_s3 = sshll.u32 %s161_s30, 4  ;;  %s866_s14 = scalar_lea.hbm %s1468_s2, %s973_s28  ;;  %s869_s3 = int_to_ptr.vmem [resolvable:$true] %s868_s3 }
  0x39   : > { %238 = vmatpush1.msra.mxu0 %v1273_v2  ;;  %375 = vmatpush1.msra.mxu1 %v1273_v2  ;;  %v188_v9 = vld [vmem:[%s1467_s1] sm:$0xff]  ;;  %v189_v10 = vld [vmem:[%s1467_s1 + $0x8] sm:$0xff]  ;;  %v190_v11 = vld [vmem:[%s1467_s1 + $0x10] sm:$0xff]  ;;  %s854_s16 = scalar_lea.sflag [#allocation5], %s1261_s29  ;;  %s1076_s17 = scalar_lea.vmem %s869_s3, 128 }
  0x3a   : > { %239 = vmatprep.subr.mxu0 %v1275_v3  ;;  %376 = vmatprep.subr.mxu1 %v1275_v3  ;;  %v191_v12 = vld [vmem:[%s1467_s1 + $0x18] sm:$0xff]  ;;  %v326_v29 = vld [vmem:[%s1467_s1 + $0x20] sm:$0xff]  ;;  %v327_v30 = vld [vmem:[%s1467_s1 + $0x28] sm:$0xff]  ;;  %p1077_p10 = scmp.ne.s32.totalorder %s869_s3, %s1076_s17  ;;  %p1478_p11 = scmp.ne.s32.totalorder %s1473_s21, 0 }
  0x3b   : > { %240 = vmatpush1.msra.mxu0 %v1278_v4  ;;  %377 = vmatpush1.msra.mxu1 %v1278_v4  ;;  %v328_v31 = vld [vmem:[%s1467_s1 + $0x30] sm:$0xff]  ;;  %v329_v32 = vld [vmem:[%s1467_s1 + $0x38] sm:$0xff]  ;;  %v463_v49 = vld [vmem:[%s1467_s1 + $0x40] sm:$0xff]  ;;  %s1147_s19 = smov [#allocation6]  }
  0x3c   : > { %241 = vmatprep.subr.mxu0 %v1282_v5  ;;  %378 = vmatprep.subr.mxu1 %v1282_v5  ;;  %v464_v50 = vld [vmem:[%s1467_s1 + $0x48] sm:$0xff]  ;;  %v465_v51 = vld [vmem:[%s1467_s1 + $0x50] sm:$0xff]  ;;  %v466_v52 = vld [vmem:[%s1467_s1 + $0x58] sm:$0xff]  ;;  %p1078_p12 = pnand %p1077_p10, %p1478_p11  ;;  %s1080_s23 = sshll.u32 %s1147_s19, 4  ;;  %s1081_s23 = int_to_ptr.vmem [resolvable:$false] %s1080_s23 }
  0x3d   : > { %242 = vmatpush1.msra.mxu0 %v1286_v6  ;;  %379 = vmatpush1.msra.mxu1 %v1286_v6  ;;  %s1082_s13 = scalar_lea.vmem %s1081_s23, 256  ;;  %p1083_p5 = scmp.lt.s32.totalorder %s869_s3, %s1081_s23 }
  0x3e   : > { %243 = vmatprep.subr.mxu0 %v1290_v7  ;;  %380 = vmatprep.subr.mxu1 %v1290_v7  ;;  %p1079_p4 = pneg %p1078_p12  ;;  %p1084_p7 = scmp.lt.s32.totalorder %s1082_s13, %s1076_s17 }
  0x3f   : > { %244 = vmatpush1.msra.mxu0 %v1294_v8  ;;  %381 = vmatpush1.msra.mxu1 %v1294_v8 }
  0x40   : > { %245 = vmatprep.subr.mxu0 %v1146_v0  ;;  %p1085_p8 = por %p1084_p7, %p1083_p5 }
  0x41   : > { %246 = vmatpush1.msra.mxu0 %v1146_v0 }
  0x42   : > { %247 = vmatprep.subr.mxu0 %v1146_v0  ;;  %p1086_p9 = pnand %p1085_p8, %p1079_p4 }
  0x43   : > { %248 = vmatpush1.msra.mxu0 %v1146_v0 }
  0x44   : > { %249 = vmatprep.subr.mxu0 %v1146_v0 }
  0x45   : > { %250 = vmatpush1.msra.mxu0 %v1146_v0 }
  0x46   : > { %251 = vmatprep.subr.mxu0 %v1146_v0 }
  0x47   : > { %252 = vmatpush1.msra.mxu0 %v1146_v0 }
  0x48   : > { %947 = vmatmul.mubr.msk.f32.vlgmr.msra.gmra.mxu0 %vm208_vm0, %v188_v9  ;;  %511 = vmatprep.subr.mxu0 %v1271_v1 }
  0x49   : > { %291 = vmatprep.mubr.f32.mxu0 %v1146_v0  ;;  %512 = vmatpush1.msra.mxu0 %v1273_v2 }
  0x4a   : > { %513 = vmatprep.subr.mxu0 %v1275_v3 }
  0x4b   : > { %514 = vmatpush1.msra.mxu0 %v1278_v4 }
  0x4c   : > { %948 = vmatmul.mubr.msk.f32.gmra.mxu0 %vm208_vm0, %v189_v10  ;;  %515 = vmatprep.subr.mxu0 %v1282_v5 }
  0x4d   : > { %297 = vmatprep.mubr.f32.mxu0 %v1146_v0  ;;  %516 = vmatpush1.msra.mxu0 %v1286_v6 }
  0x4e   : > { %517 = vmatprep.subr.mxu0 %v1290_v7 }
  0x4f   : > { %518 = vmatpush1.msra.mxu0 %v1294_v8 }
  0x50   : > { %949 = vmatmul.mubr.msk.f32.gmra.mxu0 %vm208_vm0, %v190_v11 }
  0x51   : > { %303 = vmatprep.mubr.f32.mxu0 %v1146_v0 }
  0x54   : > { %950 = vmatmul.mubr.msk.f32.gmra.mxu0 %vm208_vm0, %v191_v12 }
  0x55   : > { %559 = vmatprep.mubr.f32.mxu0 %v1146_v0 }
 0x108   : > { %v287_v13 = vpop.f32.mrf.mxu0 }
 0x109   : > { %v310_v28 = vmax.f32 %v287_v13, 0.0 }
 0x10a   : > { %v289_v14 = vpop.f32.mrf.mxu0 }
 0x10b   : > { %v311_v27 = vmax.f32 %v289_v14, 0.0  ;;  %v600_v14 = vld [vmem:[%s1467_s1 + $0x60] sm:$0xff] }
 0x10c   : > { %v293_v15 = vpop.f32.mrf.mxu0 }
 0x10d   : > { %v312_v26 = vmax.f32 %v293_v15, 0.0  ;;  %v601_v15 = vld [vmem:[%s1467_s1 + $0x68] sm:$0xff] }
 0x10e   : > { %v295_v16 = vpop.f32.mrf.mxu0 }
 0x10f   : > { %v313_v25 = vmax.f32 %v295_v16, 0.0 }
 0x110   : > { %v299_v17 = vpop.f32.mrf.mxu0 }
 0x111   : > { %v314_v24 = vmax.f32 %v299_v17, 0.0 }
 0x112   : > { %v301_v18 = vpop.f32.mrf.mxu0 }
 0x113   : > { %v315_v23 = vmax.f32 %v301_v18, 0.0 }
 0x114   : > { %v305_v19 = vpop.f32.mrf.mxu0 }
 0x115   : > { %v316_v22 = vmax.f32 %v305_v19, 0.0 }
 0x116   : > { %v307_v20 = vpop.f32.mrf.mxu0 }
 0x117   : > { %v317_v21 = vmax.f32 %v307_v20, 0.0 }
 0x119   : > { %382 = vmatprep.subr.mxu1 %v317_v21 }
 0x11a   : > { %383 = vmatpush1.msra.mxu1 %v316_v22 }
 0x11b   : > { %384 = vmatprep.subr.mxu1 %v315_v23 }
 0x11c   : > { %385 = vmatpush1.msra.mxu1 %v314_v24 }
 0x11d   : > { %386 = vmatprep.subr.mxu1 %v313_v25  ;;  %v737_v25 = vld [vmem:[%s1467_s1 + $0x80] sm:$0xff] }
 0x11e   : > { %387 = vmatpush1.msra.mxu1 %v312_v26  ;;  %v738_v26 = vld [vmem:[%s1467_s1 + $0x88] sm:$0xff] }
 0x11f   : > { %388 = vmatprep.subr.mxu1 %v311_v27 }
 0x120   : > { %389 = vmatpush1.msra.mxu1 %v310_v28 }
 0x121   : > { %951 = vmatmul.mubr.msk.f32.vlgmr.msra.gmra.mxu1 %vm208_vm0, %v326_v29  ;;  %648 = vmatprep.subr.mxu1 %v1271_v1 }
 0x122   : > { %428 = vmatprep.mubr.f32.mxu1 %v1146_v0  ;;  %649 = vmatpush1.msra.mxu1 %v1273_v2 }
 0x123   : > { %650 = vmatprep.subr.mxu1 %v1275_v3 }
 0x124   : > { %651 = vmatpush1.msra.mxu1 %v1278_v4 }
 0x125   : > { %952 = vmatmul.mubr.msk.f32.gmra.mxu1 %vm208_vm0, %v327_v30  ;;  %652 = vmatprep.subr.mxu1 %v1282_v5 }
 0x126   : > { %434 = vmatprep.mubr.f32.mxu1 %v1146_v0  ;;  %653 = vmatpush1.msra.mxu1 %v1286_v6 }
 0x127   : > { %654 = vmatprep.subr.mxu1 %v1290_v7 }
 0x128   : > { %655 = vmatpush1.msra.mxu1 %v1294_v8 }
 0x129   : > { %953 = vmatmul.mubr.msk.f32.gmra.mxu1 %vm208_vm0, %v328_v31 }
 0x12a   : > { %440 = vmatprep.mubr.f32.mxu1 %v1146_v0 }
 0x12d   : > { %954 = vmatmul.mubr.msk.f32.gmra.mxu1 %vm208_vm0, %v329_v32 }
 0x12e   : > { %696 = vmatprep.mubr.f32.mxu1 %v1146_v0 }
 0x1e1   : > { %v424_v33 = vpop.f32.mrf.mxu1 }
 0x1e2   : > { %v447_v48 = vmax.f32 %v424_v33, 0.0 }
 0x1e3   : > { %v426_v34 = vpop.f32.mrf.mxu1 }
 0x1e4   : > { %v448_v47 = vmax.f32 %v426_v34, 0.0 }
 0x1e5   : > { %v430_v35 = vpop.f32.mrf.mxu1 }
 0x1e6   : > { %v449_v46 = vmax.f32 %v430_v35, 0.0 }
 0x1e7   : > { %v432_v36 = vpop.f32.mrf.mxu1 }
 0x1e8   : > { %v450_v45 = vmax.f32 %v432_v36, 0.0 }
 0x1e9   : > { %v436_v37 = vpop.f32.mrf.mxu1 }
 0x1ea   : > { %v451_v44 = vmax.f32 %v436_v37, 0.0 }
 0x1eb   : > { %v438_v38 = vpop.f32.mrf.mxu1 }
 0x1ec   : > { %v452_v43 = vmax.f32 %v438_v38, 0.0 }
 0x1ed   : > { %v442_v39 = vpop.f32.mrf.mxu1 }
 0x1ee   : > { %v453_v42 = vmax.f32 %v442_v39, 0.0 }
 0x1ef   : > { %v444_v40 = vpop.f32.mrf.mxu1 }
 0x1f0   : > { %v454_v41 = vmax.f32 %v444_v40, 0.0 }
 0x1f2   : > { %519 = vmatprep.subr.mxu0 %v454_v41 }
 0x1f3   : > { %520 = vmatpush1.msra.mxu0 %v453_v42 }
 0x1f4   : > { %521 = vmatprep.subr.mxu0 %v452_v43 }
 0x1f5   : > { %522 = vmatpush1.msra.mxu0 %v451_v44 }
 0x1f6   : > { %523 = vmatprep.subr.mxu0 %v450_v45 }
 0x1f7   : > { %524 = vmatpush1.msra.mxu0 %v449_v46 }
 0x1f8   : > { %525 = vmatprep.subr.mxu0 %v448_v47 }
 0x1f9   : > { %526 = vmatpush1.msra.mxu0 %v447_v48 }
 0x1fa   : > { %955 = vmatmul.mubr.msk.f32.vlgmr.msra.gmra.mxu0 %vm208_vm0, %v463_v49  ;;  %777 = vmatprep.subr.mxu0 %v1271_v1 }
 0x1fb   : > { %565 = vmatprep.mubr.f32.mxu0 %v1146_v0  ;;  %778 = vmatpush1.msra.mxu0 %v1273_v2 }
 0x1fc   : > { %779 = vmatprep.subr.mxu0 %v1275_v3 }
 0x1fd   : > { %780 = vmatpush1.msra.mxu0 %v1278_v4 }
 0x1fe   : > { %956 = vmatmul.mubr.msk.f32.gmra.mxu0 %vm208_vm0, %v464_v50  ;;  %781 = vmatprep.subr.mxu0 %v1282_v5 }
 0x1ff   : > { %571 = vmatprep.mubr.f32.mxu0 %v1146_v0  ;;  %782 = vmatpush1.msra.mxu0 %v1286_v6 }
 0x200   : > { %783 = vmatprep.subr.mxu0 %v1290_v7 }
 0x201   : > { %784 = vmatpush1.msra.mxu0 %v1294_v8 }
 0x202   : > { %957 = vmatmul.mubr.msk.f32.gmra.mxu0 %vm208_vm0, %v465_v51 }
 0x203   : > { %577 = vmatprep.mubr.f32.mxu0 %v1146_v0 }
 0x206   : > { %958 = vmatmul.mubr.msk.f32.gmra.mxu0 %vm208_vm0, %v466_v52 }
 0x207   : > { %825 = vmatprep.mubr.f32.mxu0 %v1146_v0 }
 0x2ba   : > { %v561_v53 = vpop.f32.mrf.mxu0 }
 0x2bb   : > { %v584_v13 = vmax.f32 %v561_v53, 0.0 }
 0x2bc   : > { %v563_v54 = vpop.f32.mrf.mxu0 }
 0x2bd   : > { %v585_v12 = vmax.f32 %v563_v54, 0.0 }
 0x2be   : > { %v567_v55 = vpop.f32.mrf.mxu0 }
 0x2bf   : > { %v586_v11 = vmax.f32 %v567_v55, 0.0 }
 0x2c0   : > { %v569_v56 = vpop.f32.mrf.mxu0 }
 0x2c1   : > { %v587_v10 = vmax.f32 %v569_v56, 0.0 }
 0x2c2   : > { %v573_v57 = vpop.f32.mrf.mxu0 }
 0x2c3   : > { %v588_v9 = vmax.f32 %v573_v57, 0.0 }
 0x2c4   : > { %v575_v58 = vpop.f32.mrf.mxu0 }
 0x2c5   : > { %v589_v63 = vmax.f32 %v575_v58, 0.0 }
 0x2c6   : > { %v579_v59 = vpop.f32.mrf.mxu0 }
 0x2c7   : > { %v590_v62 = vmax.f32 %v579_v59, 0.0 }
 0x2c8   : > { %v581_v60 = vpop.f32.mrf.mxu0 }
 0x2c9   : > { %v591_v61 = vmax.f32 %v581_v60, 0.0 }
 0x2cb   : > { %656 = vmatprep.subr.mxu1 %v591_v61 }
 0x2cc   : > { %657 = vmatpush1.msra.mxu1 %v590_v62 }
 0x2cd   : > { %658 = vmatprep.subr.mxu1 %v589_v63 }
 0x2ce   : > { %659 = vmatpush1.msra.mxu1 %v588_v9 }
 0x2cf   : > { %660 = vmatprep.subr.mxu1 %v587_v10 }
 0x2d0   : > { %661 = vmatpush1.msra.mxu1 %v586_v11 }
 0x2d1   : > { %662 = vmatprep.subr.mxu1 %v585_v12 }
 0x2d2   : > { %663 = vmatpush1.msra.mxu1 %v584_v13 }
 0x2d3   : > { %959 = vmatmul.mubr.msk.f32.vlgmr.msra.gmra.mxu1 %vm208_vm0, %v600_v14  ;;  %974 = vmatprep.subr.mxu1 %v1271_v1  ;;  %v602_v1 = vld [vmem:[%s1467_s1 + $0x70] sm:$0xff] }
 0x2d4   : > { %702 = vmatprep.mubr.f32.mxu1 %v1146_v0  ;;  %982 = vmatpush1.msra.mxu1 %v1273_v2  ;;  %v603_v2 = vld [vmem:[%s1467_s1 + $0x78] sm:$0xff] }
 0x2d5   : > { %975 = vmatprep.subr.mxu1 %v1275_v3 }
 0x2d6   : > { %983 = vmatpush1.msra.mxu1 %v1278_v4 }
 0x2d7   : > { %960 = vmatmul.mubr.msk.f32.gmra.mxu1 %vm208_vm0, %v601_v15  ;;  %976 = vmatprep.subr.mxu1 %v1282_v5 }
 0x2d8   : > { %708 = vmatprep.mubr.f32.mxu1 %v1146_v0  ;;  %984 = vmatpush1.msra.mxu1 %v1286_v6 }
 0x2d9   : > { %977 = vmatprep.subr.mxu1 %v1290_v7 }
 0x2da   : > { %985 = vmatpush1.msra.mxu1 %v1294_v8 }
 0x2db   : > { %961 = vmatmul.mubr.msk.f32.gmra.mxu1 %vm208_vm0, %v602_v1 }
 0x2dc   : > { %714 = vmatprep.mubr.f32.mxu1 %v1146_v0 }
 0x2df   : > { %962 = vmatmul.mubr.msk.f32.gmra.mxu1 %vm208_vm0, %v603_v2 }
 0x2e0   : > { %831 = vmatprep.mubr.f32.mxu1 %v1146_v0 }
 0x393   : > { %v698_v3 = vpop.f32.mrf.mxu1 }
 0x394   : > { %v721_v24 = vmax.f32 %v698_v3, 0.0 }
 0x395   : > { %v700_v4 = vpop.f32.mrf.mxu1 }
 0x396   : > { %v722_v23 = vmax.f32 %v700_v4, 0.0 }
 0x397   : > { %v704_v5 = vpop.f32.mrf.mxu1 }
 0x398   : > { %v723_v0 = vmax.f32 %v704_v5, 0.0 }
 0x399   : > { %v706_v6 = vpop.f32.mrf.mxu1 }
 0x39a   : > { %v724_v22 = vmax.f32 %v706_v6, 0.0 }
 0x39b   : > { %v710_v16 = vpop.f32.mrf.mxu1 }
 0x39c   : > { %v725_v21 = vmax.f32 %v710_v16, 0.0 }
 0x39d   : > { %v712_v7 = vpop.f32.mrf.mxu1 }
 0x39e   : > { %v726_v20 = vmax.f32 %v712_v7, 0.0 }
 0x39f   : > { %v716_v17 = vpop.f32.mrf.mxu1 }
 0x3a0   : > { %v727_v19 = vmax.f32 %v716_v17, 0.0 }
 0x3a1   : > { %v718_v8 = vpop.f32.mrf.mxu1 }
 0x3a2   : > { %v728_v18 = vmax.f32 %v718_v8, 0.0 }
 0x3a4   : > { %785 = vmatprep.subr.mxu0 %v728_v18  ;;  %978 = vmatprep.subr.mxu1 %v728_v18 }
 0x3a5   : > { %786 = vmatpush1.msra.mxu0 %v727_v19  ;;  %986 = vmatpush1.msra.mxu1 %v727_v19 }
 0x3a6   : > { %787 = vmatprep.subr.mxu0 %v726_v20  ;;  %979 = vmatprep.subr.mxu1 %v726_v20 }
 0x3a7   : > { %788 = vmatpush1.msra.mxu0 %v725_v21  ;;  %987 = vmatpush1.msra.mxu1 %v725_v21 }
 0x3a8   : > { %789 = vmatprep.subr.mxu0 %v724_v22  ;;  %980 = vmatprep.subr.mxu1 %v724_v22 }
 0x3a9   : > { %790 = vmatpush1.msra.mxu0 %v723_v0  ;;  %988 = vmatpush1.msra.mxu1 %v723_v0 }
 0x3aa   : > { %791 = vmatprep.subr.mxu0 %v722_v23  ;;  %981 = vmatprep.subr.mxu1 %v722_v23 }
 0x3ab   : > { %792 = vmatpush1.msra.mxu0 %v721_v24  ;;  %989 = vmatpush1.msra.mxu1 %v721_v24 }
 0x3ac   : > { %963 = vmatmul.mubr.msk.f32.vlgmr.msra.gmra.mxu0 %vm208_vm0, %v737_v25  ;;  %964 = vmatmul.mubr.msk.f32.vlgmr.msra.gmra.mxu1 %vm208_vm0, %v738_v26 }
 0x46c   : > { %v827_v27 = vpop.f32.mrf.mxu0  ;;  %v833_v28 = vpop.f32.mrf.mxu1 }
 0x46d   : > { %v965_v29 = vmul.f32 -1.442695, %v827_v27 }
 0x46e   : > { %v829_v30 = vpop.f32.mrf.mxu0  ;;  %v834_v31 = vpop.f32.mrf.mxu1 }
 0x46f   : > { %1040 = vpow2.f32 %v965_v29  ;;  %v966_v32 = vmul.f32 -1.442695, %v829_v30 }
 0x471   : > { %1042 = vpow2.f32 %v966_v32 }
 0x47c   : > { %v1041_v33 = vpop.eup %1040 }
 0x47d   : > { %v842_v34 = vadd.f32 1.0, %v1041_v33 }
 0x47e   : > { %v1043_v35 = vpop.eup %1042 }
 0x47f   : > { %v843_v36 = vadd.f32 1.0, %v1043_v35  ;;  %1044 = vrcp.f32 %v842_v34 }
 0x481   : > { %1046 = vrcp.f32 %v843_v36 }
 0x48c   : > { %v1045_v37 = vpop.eup %1044 }
 0x48e   : > { %v1047_v38 = vpop.eup %1046 }
 0x48f   : > { %v850_v39 = vcombine.low %v1045_v37, %v1047_v38 }
 0x491   : > { %852 = vst [vmem:[%s161_s30] sm:$0x77] %v850_v39 }
 0x492   : > { %1089 = shalt.err (!%p1086_p9)
}
 0x493   : > { %s1090_s24 = scalar_lea.hbm %s866_s14, 128  ;;  %s1094_s26 = scalar_lea.hbm %s1468_s2, 1280 }
 0x494   : > { %p1091_p0 = scmp.ne.s32.totalorder %s866_s14, %s1090_s24  ;;  %p1095_p1 = scmp.lt.s32.totalorder %s866_s14, %s1468_s2 }
 0x495   : > { %p1096_p3 = scmp.lt.s32.totalorder %s1094_s26, %s1090_s24 }
 0x496   : > { %p1092_p2 = pnand %p1091_p0, %p1478_p11 }
 0x497   : > { %p1097_p6 = por %p1096_p3, %p1095_p1 }
 0x498   : > { %p1093_p13 = pneg %p1092_p2 }
 0x49a   : > { %p1098_p10 = pnand %p1097_p6, %p1093_p13 }
 0x49c   : > { %1101 = shalt.err (!%p1098_p10)
}
 0x49d   : > { %992 = dma.vmem_to_hbm [thread:$0]  (%p1478_p11), %s869_s3, 128, %s866_s14, %s854_s16  }
 0x49e PF: > { %p1003_p12 = scmp.ge.s32.totalorder %s1140_s12, 2  ;;  %s880_s6 = sand.u32 1, %s1128_s9  }
 0x49f   : > { %p1479_p4 = scmp.ne.s32.totalorder %s1474_s22, 0  ;;  %s881_s7 = scalar_lea.sflag [#allocation5], %s880_s6 }
 0x4a1   : > { %p999_p5 = pnand %p1003_p12, %p1479_p4 }
 0x4a3   : > { %p1000_p7 = pneg %p999_p5 }
 0x4a5   : > { %1123 = dma.done.wait (%p1000_p7), %s881_s7, 128  }
 0x4a6   : > { %1125 = vsyncadd (%p1000_p7), %s881_s7, 4294967168  ;;  %p15_p8 = scmp.ge.s32.totalorder %s1188_s15, 12   ;;  %s1480_s9 = smov %s1132_s10 }
 0x4a7   : > { %s1481_s10 = smov %s1136_s11  ;;  %s1482_s11 = smov %s1200_s18 }
 0x4a8   : > { %s1483_s12 = smov %s1188_s15  ;;  %17 = sbr.rel (!%p15_p8) target bundleno = 5 (0x5), region = 73 }
 0x4ad   :  { %886 = vsyncpa [#allocation4], 1 }
 0x4ae   :  { %888 = vsyncpa [#allocation4 + $0x1], 1 }
 0x4af   :  { %889 = vsyncpa [#allocation5], 1 }
 0x4b0   :  { %891 = vsyncpa [#allocation5 + $0x1], 1 }

</bundles_post_ra>
